<compile_context>
chip_gen: v5e
topology: v5e:2x2
jax: 0.10.0
libtpu: 0.0.40
codegen_flags: <defaults>
</compile_context>

<pallas_src>
import functools

import numpy as np
import jax
import jax.numpy as jnp
from jax.experimental import pallas as pl
from jax.experimental.pallas import tpu as pltpu


# ----------------------------------------------------------------------------
# Kernel: out_tile = obs_tile @ W_obs + x_tile @ W_x + b   (two MXU dots, one
# f32 accumulator, no lane-axis concat, un-padded lane-exact output store).
# ----------------------------------------------------------------------------
def linear_decoder_obs_kernel(obs_ref, x_ref, w_obs_ref, w_x_ref, b_ref, o_ref):
    # obs_ref   : (TILE_B, n_idx)
    # x_ref     : (TILE_B, num_inputs)
    # w_obs_ref : (n_idx, N)        pre-transposed slice of W, VMEM-resident
    # w_x_ref   : (num_inputs, N)   pre-transposed slice of W, VMEM-resident
    # b_ref     : (1, N) float32,   VMEM-resident
    # o_ref     : (TILE_B, N)
    acc = jnp.dot(obs_ref[...].astype(w_obs_ref.dtype), w_obs_ref[...],
                  preferred_element_type=jnp.float32)
    acc = acc + jnp.dot(x_ref[...].astype(w_x_ref.dtype), w_x_ref[...],
                        preferred_element_type=jnp.float32)
    acc = acc + b_ref[...]                       # (1, N) broadcasts over TILE_B
    o_ref[...] = acc.astype(o_ref.dtype)


# ----------------------------------------------------------------------------
# One-time parameter prep (hoisted out of the forward hot path).
# ----------------------------------------------------------------------------
def prepare_decoder_params(weight, bias, n_idx, *, param_dtype=None):
    """weight: (num_outputs, n_idx + num_inputs)  (PyTorch nn.Linear layout)
       bias  : (num_outputs,)
       n_idx : feature dim of partial_obs (== len(indices))
       param_dtype: optionally cast weights (jnp.bfloat16 recommended on v6e/v7x,
                    keep float32 on v5e).
       Returns (w_obs_t, w_x_t, b_row)."""
    num_outputs, k = weight.shape
    w_t = jnp.transpose(weight)                  # (K, N)
    if param_dtype is not None:
        w_t = w_t.astype(param_dtype)
    w_obs_t = w_t[:n_idx, :]                     # (n_idx, N)
    w_x_t = w_t[n_idx:, :]                       # (num_inputs, N)
    b_row = bias.astype(jnp.float32).reshape(1, num_outputs)
    return w_obs_t, w_x_t, b_row


def _num_tensorcores():
    """Best-effort TensorCore count per device (2 on v7x, 1 on v5e/v6e)."""
    try:
        return max(1, int(getattr(jax.devices()[0], "num_cores", 1) or 1))
    except Exception:
        return 1


def _pick_tile_b(batch, max_tile_b, num_cores):
    """Pick the batch tile: a single block whenever it fits (per-grid-step
    overhead ~0.35 us dominates at these sizes); on multi-TC chips split into
    exactly num_cores parallel blocks so they shard across TensorCores."""
    if batch <= max_tile_b:
        if num_cores >= 2 and batch >= 256 and batch % (8 * num_cores) == 0:
            return batch // num_cores
        return batch
    if batch % 8 != 0:
        return batch  # single full-extent block (legal: equals the array dim)
    tile = max_tile_b - (max_tile_b % 8)
    while tile >= 8:
        if batch % tile == 0:
            return tile
        tile -= 8
    return batch


# ----------------------------------------------------------------------------
# Forward pass (equivalent to LinearDecoderWithObs.forward(x, partial_obs)).
# ----------------------------------------------------------------------------
def linear_decoder_with_obs(x, partial_obs, w_obs_t, w_x_t, b_row,
                            *, out_dtype=None, max_tile_b=4096):
    B, num_inputs = x.shape
    Bo, n_idx = partial_obs.shape
    assert B == Bo
    assert w_obs_t.shape[0] == n_idx and w_x_t.shape[0] == num_inputs
    num_outputs = w_obs_t.shape[1]
    out_dtype = x.dtype if out_dtype is None else out_dtype

    tile_b = _pick_tile_b(B, max_tile_b, _num_tensorcores())
    grid = (pl.cdiv(B, tile_b),)

    itemsize = np.dtype(np.float32).itemsize
    cost = pl.CostEstimate(
        flops=2 * B * (n_idx + num_inputs) * num_outputs,
        transcendentals=0,
        bytes_accessed=(B * (n_idx + num_inputs) * x.dtype.itemsize
                        + (n_idx + num_inputs) * num_outputs * w_obs_t.dtype.itemsize
                        + num_outputs * itemsize
                        + B * num_outputs * jnp.dtype(out_dtype).itemsize),
    )

    out = pl.pallas_call(
        linear_decoder_obs_kernel,
        out_shape=jax.ShapeDtypeStruct((B, num_outputs), out_dtype),
        grid=grid,
        in_specs=[
            pl.BlockSpec((tile_b, n_idx), lambda i: (i, 0)),        # obs tile
            pl.BlockSpec((tile_b, num_inputs), lambda i: (i, 0)),   # x tile
            pl.BlockSpec((n_idx, num_outputs), lambda i: (0, 0)),   # W_obs (resident)
            pl.BlockSpec((num_inputs, num_outputs), lambda i: (0, 0)),  # W_x (resident)
            pl.BlockSpec((1, num_outputs), lambda i: (0, 0)),       # bias (resident)
        ],
        out_specs=pl.BlockSpec((tile_b, num_outputs), lambda i: (i, 0)),
        compiler_params=pltpu.CompilerParams(
            # Batch blocks are independent -> shard across v7x's 2 TensorCores
            # (harmless no-op on single-TC v5e/v6e).
            dimension_semantics=("parallel",),
        ),
        cost_estimate=cost,
    )(partial_obs, x, w_obs_t, w_x_t, b_row)
    return out


# ----------------------------------------------------------------------------
# Deterministic parameter init (orthogonal weight, gain=sqrt(2); zero bias),
# matching the PyTorch init_ closure in the module.
# ----------------------------------------------------------------------------
def orthogonal_init(key, shape, gain):
    rows, cols = shape
    flat = jax.random.normal(key, (max(rows, cols), min(rows, cols)), jnp.float32)
    q, r = jnp.linalg.qr(flat)
    d = jnp.diag(r)
    q = q * jnp.where(d >= 0, 1.0, -1.0)[None, :]
    if rows < cols:
        q = q.T
    return gain * q[:rows, :cols]


if __name__ == "__main__":
    # Small shapes consistent with the module's forward.
    B = 8            # batch
    num_inputs = 32  # feature dim of x
    n_idx = 16       # len(indices) -> feature dim of partial_obs
    num_outputs = 32

    key = jax.random.PRNGKey(0)
    kx, kobs, kw, kx2, kobs2 = jax.random.split(key, 5)

    x = jax.random.normal(kx, (B, num_inputs), jnp.float32)
    partial_obs = jax.random.normal(kobs, (B, n_idx), jnp.float32)

    weight = orthogonal_init(kw, (num_outputs, n_idx + num_inputs),
                             gain=float(np.sqrt(2)))
    bias = jnp.zeros((num_outputs,), jnp.float32)

    # One-time parameter prep (outside the per-step hot path).
    # On v6e / v7x pass param_dtype=jnp.bfloat16 to halve weight/input DMA;
    # demo keeps f32 so the reference check stays tight (and f32 is the
    # recommended default on v5e).
    w_obs_t, w_x_t, b_row = prepare_decoder_params(weight, bias, n_idx)

    fwd = jax.jit(linear_decoder_with_obs,
                  static_argnames=("out_dtype", "max_tile_b"))

    # --- small-batch path (single block, grid=(1,)) -------------------------
    out = fwd(x, partial_obs, w_obs_t, w_x_t, b_row)
    out = jax.block_until_ready(out)
    ref = jnp.concatenate((partial_obs, x), axis=-1) @ weight.T + bias
    np.testing.assert_allclose(np.asarray(out), np.asarray(ref),
                               rtol=1e-5, atol=1e-5)

    # --- larger batch (single block on v5e/v6e; 2 parallel blocks on v7x) ---
    B2 = 512
    x2 = jax.random.normal(kx2, (B2, num_inputs), jnp.float32)
    obs2 = jax.random.normal(kobs2, (B2, n_idx), jnp.float32)
    out2 = fwd(x2, obs2, w_obs_t, w_x_t, b_row)
    out2 = jax.block_until_ready(out2)
    ref2 = jnp.concatenate((obs2, x2), axis=-1) @ weight.T + bias
    np.testing.assert_allclose(np.asarray(out2), np.asarray(ref2),
                               rtol=1e-5, atol=1e-4)

    # TODO(synk): if the producers of x/partial_obs are controllable, store them
    # contiguously as one (B, n_idx+num_inputs) array and use a single input
    # BlockSpec (one DMA stream, one dot).

    print("KERNEL_OK")
</pallas_src>

<mosaic_0001>
module attributes {stable_mosaic.version = 11 : i64} {
  func.func @linear_decoder_obs_kernel(%arg0: i32, %arg1: memref<8x16xf32, #tpu.memory_space<vmem>>, %arg2: memref<8x32xf32, #tpu.memory_space<vmem>>, %arg3: memref<16x32xf32, #tpu.memory_space<vmem>>, %arg4: memref<32x32xf32, #tpu.memory_space<vmem>>, %arg5: memref<1x32xf32, #tpu.memory_space<vmem>>, %arg6: memref<8x32xf32, #tpu.memory_space<vmem>>) attributes {dimension_semantics = [#tpu.dimension_semantics<parallel>], iteration_bounds = array<i64: 1>, scalar_prefetch = 0 : i64, scratch_operands = 0 : i64, tpu.core_type = #tpu.core_type<tc>, window_params = [{transform_indices = @transform_0, window_bounds = array<i64: 8, 16>}, {transform_indices = @transform_1, window_bounds = array<i64: 8, 32>}, {pipeline_mode = #tpu.pipeline_mode<synchronous>, transform_indices = @transform_2, window_bounds = array<i64: 16, 32>}, {pipeline_mode = #tpu.pipeline_mode<synchronous>, transform_indices = @transform_3, window_bounds = array<i64: 32, 32>}, {pipeline_mode = #tpu.pipeline_mode<synchronous>, transform_indices = @transform_4, window_bounds = array<i64: 1, 32>}, {transform_indices = @transform_5, window_bounds = array<i64: 8, 32>}]} {
    %c0 = arith.constant 0 : index
    %c0_0 = arith.constant 0 : index
    %0 = vector.load %arg1[%c0, %c0_0] : memref<8x16xf32, #tpu.memory_space<vmem>>, vector<8x16xf32>
    %c0_1 = arith.constant 0 : index
    %c0_2 = arith.constant 0 : index
    %1 = vector.load %arg3[%c0_1, %c0_2] : memref<16x32xf32, #tpu.memory_space<vmem>>, vector<16x32xf32>
    %cst = arith.constant dense<0.000000e+00> : vector<8x32xf32>
    %2 = tpu.matmul %0, %1, %cst {dimension_numbers = #tpu.dot_dimension_numbers<[1], [0], [0], [1], [0, 0, 1, 1], [], []>} : vector<8x16xf32>, vector<16x32xf32>, vector<8x32xf32> -> vector<8x32xf32>
    %c0_3 = arith.constant 0 : index
    %c0_4 = arith.constant 0 : index
    %3 = vector.load %arg2[%c0_3, %c0_4] : memref<8x32xf32, #tpu.memory_space<vmem>>, vector<8x32xf32>
    %c0_5 = arith.constant 0 : index
    %c0_6 = arith.constant 0 : index
    %4 = vector.load %arg4[%c0_5, %c0_6] : memref<32x32xf32, #tpu.memory_space<vmem>>, vector<32x32xf32>
    %cst_7 = arith.constant dense<0.000000e+00> : vector<8x32xf32>
    %5 = tpu.matmul %3, %4, %cst_7 {dimension_numbers = #tpu.dot_dimension_numbers<[1], [0], [0], [1], [0, 0, 1, 1], [], []>} : vector<8x32xf32>, vector<32x32xf32>, vector<8x32xf32> -> vector<8x32xf32>
    %6 = arith.addf %2, %5 : vector<8x32xf32>
    %c0_8 = arith.constant 0 : index
    %c0_9 = arith.constant 0 : index
    %7 = vector.load %arg5[%c0_8, %c0_9] : memref<1x32xf32, #tpu.memory_space<vmem>>, vector<1x32xf32>
    %8 = vector.broadcast %7 : vector<1x32xf32> to vector<8x32xf32>
    %9 = arith.addf %6, %8 : vector<8x32xf32>
    %c0_10 = arith.constant 0 : index
    %c0_11 = arith.constant 0 : index
    %10 = vector.load %arg6[%c0_10, %c0_11] : memref<8x32xf32, #tpu.memory_space<vmem>>, vector<8x32xf32>
    tpu.vector_store %arg6[%c0_10, %c0_11], %9 {strides = array<i32>} : memref<8x32xf32, #tpu.memory_space<vmem>>, vector<8x32xf32>,
    return
  }
  func.func @transform_0(%arg0: i32) -> (i32, i32) {
    %c0_i32 = arith.constant 0 : i32
    %c0_i32_0 = arith.constant 0 : i32
    return %arg0, %c0_i32 : i32, i32
  }
  func.func @transform_1(%arg0: i32) -> (i32, i32) {
    %c0_i32 = arith.constant 0 : i32
    %c0_i32_0 = arith.constant 0 : i32
    return %arg0, %c0_i32 : i32, i32
  }
  func.func @transform_2(%arg0: i32) -> (i32, i32) {
    %c0_i32 = arith.constant 0 : i32
    %c0_i32_0 = arith.constant 0 : i32
    %c0_i32_1 = arith.constant 0 : i32
    return %c0_i32, %c0_i32_0 : i32, i32
  }
  func.func @transform_3(%arg0: i32) -> (i32, i32) {
    %c0_i32 = arith.constant 0 : i32
    %c0_i32_0 = arith.constant 0 : i32
    %c0_i32_1 = arith.constant 0 : i32
    return %c0_i32, %c0_i32_0 : i32, i32
  }
  func.func @transform_4(%arg0: i32) -> (i32, i32) {
    %c0_i32 = arith.constant 0 : i32
    %c0_i32_0 = arith.constant 0 : i32
    %c0_i32_1 = arith.constant 0 : i32
    return %c0_i32, %c0_i32_0 : i32, i32
  }
  func.func @transform_5(%arg0: i32) -> (i32, i32) {
    %c0_i32 = arith.constant 0 : i32
    %c0_i32_0 = arith.constant 0 : i32
    return %arg0, %c0_i32 : i32, i32
  }
}

</mosaic_0001>

<bundles_post_ra>
// kernel: linear_decoder_with_obs.1
= control target key start
LH: loop header
LB: loop body
LE: loop exit
PB: predicated region body
PF: predicated region fallthrough
CT: control target
= control target key end

     0   :  { %10 = vsyncpa [#allocation3], 0  ;;  %s354_s0 = inlined_call_operand.hbm [shape: f32[8,16], index: 0, kind: input, shape index: {}]   ;;  %s355_s1 = inlined_call_operand.hbm [shape: f32[8,32], index: 1, kind: input, shape index: {}]   ;;  %s356_s2 = inlined_call_operand.hbm [shape: f32[16,32], index: 2, kind: input, shape index: {}]   ;;  %s357_s3 = inlined_call_operand.hbm [shape: f32[32,32], index: 3, kind: input, shape index: {}]   ;;  %s358_s4 = inlined_call_operand.vmem [shape: f32[1,32], index: 4, kind: input, shape index: {}]   ;;  %s359_s5 = inlined_call_operand.hbm [shape: f32[8,32], index: 5, kind: output, shape index: {}]  }
   0x1   :  { %11 = vsyncpa [#allocation6], 0 }
   0x2   :  { %12 = vsyncpa [#allocation9], 0  ;;  %s30_s20 = sshll.u32 %s355_s1, 4  ;;  %s31_s20 = int_to_ptr.hbm [resolvable:$true] %s30_s20 }
   0x3   :  { %13 = vsyncpa [#allocation4], 0  ;;  %s299_s21 = smov [#allocation5]   ;;  %s19_s25 = sshll.u32 %s354_s0, 4  ;;  %s20_s25 = int_to_ptr.hbm [resolvable:$true] %s19_s25 }
   0x4   :  { %s32_s22 = sshll.u32 %s299_s21, 4  ;;  %s300_s26 = smov [#allocation2]   ;;  %s33_s22 = int_to_ptr.vmem [resolvable:$true] %s32_s22 }
   0x5   :  { %35 = dma.hbm_to_vmem [thread:$0]  %s31_s20, 128, %s33_s22, [#allocation6]  }
   0x6   :  { %s21_s27 = sshll.u32 %s300_s26, 4  ;;  %s40_s30 = sshll.u32 %s356_s2, 4  ;;  %s22_s27 = int_to_ptr.vmem [resolvable:$true] %s21_s27  ;;  %s41_s30 = int_to_ptr.hbm [resolvable:$true] %s40_s30 }
   0x7   :  { %24 = dma.hbm_to_vmem [thread:$0]  %s20_s25, 128, %s22_s27, [#allocation3]  }
   0x8   :  { %s301_s1 = smov [#allocation7]   ;;  %s53_s9 = sshll.u32 %s357_s3, 4  ;;  %s54_s9 = int_to_ptr.hbm [resolvable:$true] %s53_s9 }
   0x9   :  { %s42_s6 = sshll.u32 %s301_s1, 4  ;;  %s302_s10 = smov 128   ;;  %s43_s6 = int_to_ptr.vmem [resolvable:$true] %s42_s6 }
   0xa   :  { %s303_s0 = smov 8   ;;  %s304_s11 = smov [#allocation8]  }
   0xb   :  { %48 = dma.hbm_to_vmem [thread:$0]  %s41_s30, 256, %s43_s6, [#allocation6], %s302_s10, %s302_s10, %s303_s0  }
   0xc   :  { %s55_s12 = sshll.u32 %s304_s11, 4  ;;  %s56_s12 = int_to_ptr.vmem [resolvable:$true] %s55_s12 }
   0xd   :  { %61 = dma.hbm_to_vmem [thread:$0]  %s54_s9, 512, %s56_s12, [#allocation9], %s302_s10, %s302_s10, %s303_s0  }
   0xe   :  { %291 = dma.done.wait [#allocation3], 128  }
   0xf   :  { %292 = vsyncadd [#allocation3], 4294967168 }
  0x10   :  { %293 = dma.done.wait [#allocation6], 384  }
  0x11   :  { %294 = vsyncadd [#allocation6], 4294966912 }
  0x12   :  { %295 = dma.done.wait [#allocation9], 512  }
  0x13   :  { %296 = vsyncadd [#allocation9], 4294966784  ;;  %v87_v0 = vld [vmem:[#allocation8 + $0x18] sm:$0xff]  ;;  %v86_v1 = vld [vmem:[#allocation8 + $0x10] sm:$0xff]  ;;  %vm112_vm0 = vcmask 130048   ;;  %vm88_vm1 = vcmask 261120  }
  0x14   :  { %104 = vmatpush.msra.mxu0 %v87_v0  ;;  %v82_v2 = vld [vmem:[#allocation7 + $0x8] sm:$0xff]  ;;  %v81_v3 = vld [vmem:[#allocation7] sm:$0xff]  ;;  %v85_v4 = vld [vmem:[#allocation8 + $0x8] sm:$0xff]  ;;  %s305_s13 = smov [#allocation10]   ;;  %s149_s17 = sshll.u32 %s359_s5, 4  ;;  %s150_s17 = int_to_ptr.hbm [resolvable:$true] %s149_s17 }
  0x15   :  { %130 = vmatpush.msra.mxu1 %v82_v2  ;;  %v80_v5 = vld [vmem:[#allocation2] sm:$0xff]  ;;  %v83_v7 = vld [vmem:[#allocation5] sm:$0xff]  ;;  %s147_s14 = sshll.u32 %s305_s13, 4  ;;  %s148_s14 = int_to_ptr.vmem [resolvable:$true] %s147_s14 }
  0x16   :  { %105 = vmatpush.msra.mxu0 %v86_v1  ;;  %v84_v6 = vld [vmem:[#allocation8] sm:$0xff] }
  0x17   :  { %131 = vmatpush.msra.mxu1 %v81_v3  ;;  %v170_v9 = vld [vmem:[%s358_s4] ss:$0 sm:$0xff] }
  0x18   :  { %106 = vmatpush.msra.mxu0 %v85_v4  ;;  %162 = vmatmul.msk.f32.vlgmr.msra.gmra.mxu1 %vm112_vm0, %v80_v5 }
  0x1a   :  { %107 = vmatpush.msra.mxu0 %v84_v6 }
  0x1b   :  { %161 = vmatmul.msk.f32.vlgmr.msra.gmra.mxu0 %vm88_vm1, %v83_v7 }
  0x95   :  { %v133_v8 = vpop.f32.mrf.mxu1 }
  0x98   :  { %v109_v10 = vpop.f32.mrf.mxu0 }
  0x99   :  { %v134_v11 = vadd.f32 %v133_v8, %v109_v10 }
  0x9b   :  { %v140_v12 = vadd.f32 %v170_v9, %v134_v11 }
  0x9d   :  { %141 = vst.msk [vmem:[#allocation10] sm:$0xff] %vm88_vm1, %v140_v12 }
  0x9e   :  { %152 = dma.vmem_to_hbm [thread:$0]  %s148_s14, 128, %s150_s17, [#allocation4]  }
  0x9f   :  { %297 = dma.done.wait [#allocation4], 128  }
  0xa0   :  { %298 = vsyncadd [#allocation4], 4294967168 }
  0xa1   :  { %157 = vsyncpa [#allocation3], 1 }
  0xa2   :  { %158 = vsyncpa [#allocation6], 1 }
  0xa3   :  { %159 = vsyncpa [#allocation9], 1 }
  0xa4   :  { %160 = vsyncpa [#allocation4], 1 }

</bundles_post_ra>
